<compile_context>
chip_gen: v7x
topology: tpu7x:2x2x1
jax: 0.10.0
libtpu: 0.0.40
codegen_flags: <defaults>
</compile_context>

<pallas_src>
import functools
import math

import jax
import jax.numpy as jnp
import numpy as np
from jax.experimental import pallas as pl
from jax.experimental.pallas import tpu as pltpu


JOINT_NUM = 22


# ---------------------------------------------------------------------------
# Init-time PE buffer (mirrors PEFunction.__init__ / register_buffer).
# ---------------------------------------------------------------------------
def make_positional_encoding(ft_size, time_len, att_type, joint_num=JOINT_NUM):
    if att_type == "spatial":
        pos_list = [j for _ in range(time_len) for j in range(joint_num)]
    elif att_type == "temporal":
        pos_list = list(range(joint_num * time_len))
    else:
        raise ValueError(f"unknown att_type: {att_type}")
    position = np.asarray(pos_list, dtype=np.float32)[:, None]            # (T*J, 1)
    div_term = np.exp(
        np.arange(0, ft_size, 2, dtype=np.float32) * -(math.log(10000.0) / ft_size)
    )                                                                      # (F/2,)
    pe = np.zeros((time_len * joint_num, ft_size), dtype=np.float32)
    pe[:, 0::2] = np.sin(position * div_term)
    pe[:, 1::2] = np.cos(position * div_term)
    return jnp.asarray(pe)                                                 # (T*J, F)


# ---------------------------------------------------------------------------
# Layout / tiling planning (static Python, runs at trace time).
# ---------------------------------------------------------------------------
def _round_up(x, m):
    return ((x + m - 1) // m) * m


def _sublane_tile(dtype):
    # Rows per VMEM/vreg tile: 8 for f32, 16 for bf16, 32 for int8.
    return max(8, 32 // jnp.dtype(dtype).itemsize)


def _vmem_plan():
    """Generation-aware (budget, limit): v5e/v6e have 128 MiB VMEM, v7x only 64."""
    try:
        info = pltpu.get_tpu_info()
        cap = int(getattr(info, "vmem_capacity_bytes", 64 * 1024 * 1024))
    except Exception:  # interpret mode / non-TPU tracing
        cap = 64 * 1024 * 1024
    budget = min(cap // 4, 8 * 1024 * 1024)   # target padded+double-buffered footprint
    limit = min(cap // 2, 32 * 1024 * 1024)   # scoped-VMEM ceiling (headroom over budget)
    return budget, limit


def _choose_fold(batch, n, dtype, budget_bytes, max_group_rows=512):
    """Pick G so x reshapes to (batch*G, C=n//G): C a 128-multiple (lane-dense)
    and batch*G as sublane-dense as possible.  Returns (G, C)."""
    itemsize = jnp.dtype(dtype).itemsize
    sub = _sublane_tile(dtype)
    if n % 128 != 0 or batch > 64:
        # No lane-dense fold exists, or batch is already big enough that the
        # sublane padding is negligible (and in-kernel replication would be wide).
        return 1, n
    m = n // 128
    best_g, best_util = 1, batch / _round_up(batch, sub)
    for g in range(2, min(m, max_group_rows) + 1):
        if m % g != 0:
            continue
        rows_pad = _round_up(batch * g, sub)
        # Even the smallest (128-column) block must fit the budget:
        # x + out + pe blocks, sublane-padded, double-buffered.
        min_block = 2 * itemsize * 128 * (2 * rows_pad + _round_up(g, sub))
        if min_block > budget_bytes:
            continue
        util = (batch * g) / rows_pad
        if util > best_util + 1e-12:          # ties keep the smaller G (wider C)
            best_g, best_util = g, util
    return best_g, n // best_g


def _choose_col_tile(C, rows, pe_rows, dtype, budget_bytes, min_col_steps=2):
    """Largest lane-dense column tile that (a) fits the padded, double-buffered
    VMEM budget, (b) divides C exactly when C is a 128-multiple, and (c) leaves
    >= min_col_steps grid steps when the array is wide enough (v7x megacore)."""
    itemsize = jnp.dtype(dtype).itemsize
    sub = _sublane_tile(dtype)
    rows_pad = _round_up(rows, sub)
    pe_rows_pad = _round_up(pe_rows, sub)
    # Real per-column VMEM: x + out blocks (rows_pad each) + PE block
    # (pe_rows_pad), each double-buffered by the Pallas pipeline.
    bytes_per_col = 2 * itemsize * (2 * rows_pad + pe_rows_pad)
    max_cols = max(128, budget_bytes // bytes_per_col)
    if C >= min_col_steps * 128:
        max_cols = min(max_cols, max(128, C // min_col_steps))
    if C % 128 == 0:
        m = C // 128
        tile_c = 128
        for k in range(2, m + 1):
            if m % k == 0 and 128 * k <= max_cols:
                tile_c = 128 * k
        return tile_c
    # C not a 128-multiple: full extent if it fits, else 128-multiple tiles
    # with a (masked) ragged tail.
    if C <= max_cols:
        return C
    return (max_cols // 128) * 128


# ---------------------------------------------------------------------------
# Kernel + wrapper.
# ---------------------------------------------------------------------------
def _pe_add_kernel(x_ref, pe_ref, o_ref, *, batch):
    """o = x + PE, with the (G, tile_c) PE slab replicated across the batch."""
    pe = pe_ref[...]
    if pe.shape[0] not in (1, x_ref.shape[0]):
        pe = jnp.tile(pe, (batch, 1))      # G > 1: replicate row-groups over batch
    o_ref[...] = x_ref[...] + pe           # G == 1: plain sublane broadcast


def pe_function_forward(x, pe, *, min_pallas_bytes=1 << 20):
    """PEFunction.forward: x + PE[:x.shape[1]].

    x: (batch, seq, ft_size);  pe: (time_len*joint_num, ft_size) float32.
    Output dtype follows x (PE is cast to x.dtype; for bf16 inputs this differs
    from torch's f32-promoted add only in low-order bits).
    """
    b, s, d = x.shape
    if s > pe.shape[0]:
        raise ValueError(f"seq len {s} exceeds PE table rows {pe.shape[0]}")
    pe_sl = pe[:s].astype(x.dtype)         # fused slice+cast under jit

    # Small-problem fast path: launch + per-step overhead would dominate;
    # XLA's fused add is as fast for tiny inputs.
    if x.size * jnp.dtype(x.dtype).itemsize < min_pallas_bytes:
        return x + pe_sl[None]

    n = s * d
    budget, vmem_limit = _vmem_plan()
    G, C = _choose_fold(b, n, x.dtype, budget)
    R = b * G
    tile_c = _choose_col_tile(C, R, G, x.dtype, budget)
    grid = (pl.cdiv(C, tile_c),)

    x2 = x.reshape(R, C)                   # row-major: free metadata reshape
    pe2 = pe_sl.reshape(G, C)

    out = pl.pallas_call(
        functools.partial(_pe_add_kernel, batch=b),
        out_shape=jax.ShapeDtypeStruct((R, C), x.dtype),
        grid_spec=pltpu.PrefetchScalarGridSpec(
            num_scalar_prefetch=0,
            grid=grid,
            in_specs=[
                pl.BlockSpec((R, tile_c), lambda j: (0, j)),  # x row-slab (full rows)
                pl.BlockSpec((G, tile_c), lambda j: (0, j)),  # PE slab (full rows)
            ],
            out_specs=pl.BlockSpec((R, tile_c), lambda j: (0, j)),
        ),
        compiler_params=pltpu.CompilerParams(
            dimension_semantics=("parallel",),   # column axis splits across v7x cores
            vmem_limit_bytes=vmem_limit,
        ),
    )(x2, pe2)
    return out.reshape(b, s, d)


class PEFunction:
    """Pallas port of the PyTorch PEFunction module: PE built once at init,
    forward is a jitted wrapper around the Pallas add kernel."""

    def __init__(self, ft_size, time_len, att_type, dtype=jnp.float32,
                 joint_num=JOINT_NUM, min_pallas_bytes=1 << 20):
        # Hoisted out of the per-call path: build + cast once at init.
        self.pe = make_positional_encoding(ft_size, time_len, att_type,
                                           joint_num).astype(dtype)
        self._forward = jax.jit(
            functools.partial(pe_function_forward, min_pallas_bytes=min_pallas_bytes))

    def __call__(self, x):
        return self._forward(x, self.pe)


if __name__ == "__main__":
    k1, k2 = jax.random.split(jax.random.PRNGKey(0))

    # ---- Test 1: the module's tiny demo shape, forced through the kernel ----
    batch, time_len, ft_size = 2, 2, 32
    seq = time_len * JOINT_NUM                      # 44 (forward slices PE[:, :seq])
    x = jax.random.normal(k1, (batch, seq, ft_size), dtype=jnp.float32)
    pef = PEFunction(ft_size, time_len, "spatial", min_pallas_bytes=0)  # force Pallas
    y = jax.block_until_ready(pef(x))
    y_ref = x + pef.pe[None, :seq]
    assert y.shape == x.shape
    assert jnp.allclose(y, y_ref, atol=1e-6, rtol=1e-6), "mismatch (small/spatial)"

    # ---- Test 2: larger shape exercising the multi-step, sublane-dense path ----
    batch2, time_len2, ft_size2 = 8, 16, 128
    seq2 = time_len2 * JOINT_NUM                    # 352
    x2 = jax.random.normal(k2, (batch2, seq2, ft_size2), dtype=jnp.float32)
    pef2 = PEFunction(ft_size2, time_len2, "temporal")   # > 1 MiB -> kernel path
    y2 = jax.block_until_ready(pef2(x2))
    y2_ref = x2 + pef2.pe[None, :seq2]
    assert jnp.allclose(y2, y2_ref, atol=1e-6, rtol=1e-6), "mismatch (large/temporal)"

    print("KERNEL_OK")
</pallas_src>

<mosaic_0001>
module attributes {stable_mosaic.version = 11 : i64} {
  func.func @_pe_add_kernel(%arg0: i32, %arg1: memref<22x128xf32, #tpu.memory_space<vmem>>, %arg2: memref<11x128xf32, #tpu.memory_space<vmem>>, %arg3: memref<22x128xf32, #tpu.memory_space<vmem>>) attributes {dimension_semantics = [#tpu.dimension_semantics<parallel>], iteration_bounds = array<i64: 1>, scalar_prefetch = 0 : i64, scratch_operands = 0 : i64, tpu.core_type = #tpu.core_type<tc>, window_params = [{transform_indices = @transform_0, window_bounds = array<i64: 22, 128>}, {transform_indices = @transform_1, window_bounds = array<i64: 11, 128>}, {transform_indices = @transform_2, window_bounds = array<i64: 22, 128>}]} {
    %c0 = arith.constant 0 : index
    %c0_0 = arith.constant 0 : index
    %0 = vector.load %arg2[%c0, %c0_0] : memref<11x128xf32, #tpu.memory_space<vmem>>, vector<11x128xf32>
    %1 = tpu.concatenate %0, %0 in 0 : vector<11x128xf32>, vector<11x128xf32> -> vector<22x128xf32>
    %c0_1 = arith.constant 0 : index
    %c0_2 = arith.constant 0 : index
    %2 = vector.load %arg1[%c0_1, %c0_2] : memref<22x128xf32, #tpu.memory_space<vmem>>, vector<22x128xf32>
    %3 = arith.addf %2, %1 : vector<22x128xf32>
    %c0_3 = arith.constant 0 : index
    %c0_4 = arith.constant 0 : index
    %4 = vector.load %arg3[%c0_3, %c0_4] : memref<22x128xf32, #tpu.memory_space<vmem>>, vector<22x128xf32>
    tpu.vector_store %arg3[%c0_3, %c0_4], %3 {strides = array<i32>} : memref<22x128xf32, #tpu.memory_space<vmem>>, vector<22x128xf32>,
    return
  }
  func.func @transform_0(%arg0: i32) -> (i32, i32) {
    %c0_i32 = arith.constant 0 : i32
    %c0_i32_0 = arith.constant 0 : i32
    return %c0_i32, %arg0 : i32, i32
  }
  func.func @transform_1(%arg0: i32) -> (i32, i32) {
    %c0_i32 = arith.constant 0 : i32
    %c0_i32_0 = arith.constant 0 : i32
    return %c0_i32, %arg0 : i32, i32
  }
  func.func @transform_2(%arg0: i32) -> (i32, i32) {
    %c0_i32 = arith.constant 0 : i32
    %c0_i32_0 = arith.constant 0 : i32
    return %c0_i32, %arg0 : i32, i32
  }
}

</mosaic_0001>

<bundles_post_ra>
// kernel: pe_function_forward.1
= control target key start
LH: loop header
LB: loop body
LE: loop exit
PB: predicated region body
PF: predicated region fallthrough
CT: control target
= control target key end

     0   :  { %vm15_vm0 = vcmask 1042432   ;;  %s74_s0 = inlined_call_operand.vmem [shape: f32[22,128], index: 0, kind: input, shape index: {}]   ;;  %s75_s1 = inlined_call_operand.vmem [shape: f32[11,128], index: 1, kind: input, shape index: {}]   ;;  %s76_s2 = inlined_call_operand.vmem [shape: f32[22,128], index: 2, kind: output, shape index: {}]  }
   0x1   :  { %v11_v0 = vld [vmem:[%s75_s1] sm:$0xff]  ;;  %v12_v1 = vld [vmem:[%s75_s1 + $0x8] sm:$0x7]  ;;  %v24_v7 = vld [vmem:[%s74_s0 + $0x10] sm:$0x3f] }
   0x2   :  { %v22_v2 = vld [vmem:[%s74_s0] sm:$0xff]  ;;  %v16_v3 = vrot.slane %v11_v0, 5  ;;  %v17_v4 = vrot.slane %v12_v1, 5  ;;  %v23_v6 = vld [vmem:[%s74_s0 + $0x8] sm:$0xff] }
   0x3   :  { %v25_v5 = vadd.f32 %v22_v2, %v11_v0 }
   0x4   :  { %v21_v8 = vsel %vm15_vm0, %v12_v1, %v16_v3  ;;  %v18_v9 = vsel %vm15_vm0, %v16_v3, %v17_v4 }
   0x5   :  { %28 = vst [vmem:[%s76_s2] sm:$0xff] %v25_v5  ;;  %v26_v10 = vadd.f32 %v23_v6, %v21_v8  ;;  %v27_v11 = vadd.f32 %v24_v7, %v18_v9 }
   0x7   :  { %29 = vst [vmem:[%s76_s2 + $0x8] sm:$0xff] %v26_v10  ;;  %30 = vst [vmem:[%s76_s2 + $0x10] sm:$0x3f] %v27_v11 }

</bundles_post_ra>
